<compile_context>
chip_gen: v7x
topology: tpu7x:2x2x1
jax: 0.10.0
libtpu: 0.0.40
codegen_flags: <defaults>
</compile_context>

<pallas_src>
from math import pi

import jax
import jax.numpy as jnp
from jax.experimental import pallas as pl
from jax.experimental.pallas import tpu as pltpu

H = 100        # logical hidden width
H_PAD = 128    # lane-padded hidden width
O = 2          # logical output width
O_PAD = 128    # lane-padded width used only for the last MXU matmul operand
BLOCK_M = 256  # fused-M row tile (matches v6e/v7x 256-wide MXU; 128 is enough on v5e)


def _round_up(x, m):
    return (x + m - 1) // m * m


# ---------------------------------------------------------------------------
# Shared tail: ReLU -> Linear(100,100) -> ReLU -> Linear(100,2), padded lanes.
# Zero-padded weight/bias columns keep padded lanes exactly 0 through ReLU.
# ---------------------------------------------------------------------------
def _tail_layers(h1, w2, b2, w3, b3):
    h1 = jnp.maximum(h1, 0.0)
    h2 = jnp.dot(h1, w2, preferred_element_type=jnp.float32) + b2
    h2 = jnp.maximum(h2, 0.0)
    out = jnp.dot(h2, w3, preferred_element_type=jnp.float32) + b3
    return out[:, :O]            # store only the 2 real lanes (one masked vst)


# ---------------------------------------------------------------------------
# Single-evaluation kernel (matches MLP.forward(t, y) exactly).
# ---------------------------------------------------------------------------
def mlp_single_kernel(s_ref, y_ref, w1y_ref, w1e_ref, b1_ref,
                      w2_ref, b2_ref, w3_ref, b3_ref, o_ref):
    sin_t = s_ref[0]                                  # sin(2*pi*t), precomputed (SMEM)
    y = y_ref[...]                                    # (B, 2)
    fused_b1 = sin_t * w1e_ref[...] + b1_ref[...]     # excitation folded into the bias
    # K=2 contraction as two VPU rank-1 broadcast FMAs (no MXU push/pop at tiny M).
    h1 = y[:, 0:1] * w1y_ref[0:1, :] + y[:, 1:2] * w1y_ref[1:2, :] + fused_b1
    o_ref[...] = _tail_layers(h1, w2_ref[...], b2_ref[...], w3_ref[...], b3_ref[...])


@jax.jit
def mlp_forward(t, y, padded_params):
    """t: scalar, y: (B, 2) -> (B, 2)."""
    B = y.shape[0]
    sin_t = jnp.sin((2.0 * pi) * jnp.asarray(t, jnp.float32)).reshape(1)
    smem = pl.BlockSpec(memory_space=pltpu.MemorySpace.SMEM)
    vmem = pl.BlockSpec(memory_space=pltpu.MemorySpace.VMEM)
    return pl.pallas_call(
        mlp_single_kernel,
        out_shape=jax.ShapeDtypeStruct((B, O), jnp.float32),
        in_specs=[smem] + [vmem] * 8,
        out_specs=vmem,
    )(sin_t, y.astype(jnp.float32), *padded_params)


# ---------------------------------------------------------------------------
# Amortized path: T independent (t_i, y_i) evaluations fused into the matmul M
# dimension. One pallas_call, a handful of large M-blocks, weights resident.
# ---------------------------------------------------------------------------
def mlp_fused_kernel(y_ref, exc_ref, w1y_ref, w1e_ref, b1_ref,
                     w2_ref, b2_ref, w3_ref, b3_ref, o_ref):
    # Layer 1: K=2 MXU dot (fine at large M) + rank-1 excitation FMA + bias.
    h1 = (jnp.dot(y_ref[...], w1y_ref[...], preferred_element_type=jnp.float32)
          + exc_ref[...] * w1e_ref[...] + b1_ref[...])
    o_ref[...] = _tail_layers(h1, w2_ref[...], b2_ref[...], w3_ref[...], b3_ref[...])


@jax.jit
def mlp_forward_many(ts, ys, padded_params):
    """ts: (T,), ys: (T, B, 2) -> (T, B, 2). One kernel launch for all T."""
    T, B, _ = ys.shape
    M = T * B
    y2 = ys.astype(jnp.float32).reshape(M, 2)
    # Excitation hoisted out of the kernel: per-row column sin(2*pi*t_i), (M, 1).
    exc = jnp.repeat(jnp.sin((2.0 * pi) * ts.astype(jnp.float32)), B)[:, None]

    tm = min(BLOCK_M, _round_up(M, 8))
    m_pad = _round_up(M, tm)
    if m_pad != M:
        y2 = jnp.pad(y2, ((0, m_pad - M), (0, 0)))
        exc = jnp.pad(exc, ((0, m_pad - M), (0, 0)))
    n_blocks = m_pad // tm

    def row_spec(cols):
        return pl.BlockSpec((tm, cols), lambda i: (i, 0))

    def resident(p):  # constant index_map -> DMA'd once, stays VMEM-resident
        return pl.BlockSpec(p.shape, lambda i: (0, 0))

    # Only split across v7x's two TensorCores when per-core work amortizes the
    # duplicated resident-weight DMA and warm-up (no-op on v5e/v6e: 1 TC).
    sem = "parallel" if (n_blocks >= 2 and m_pad >= 512) else "arbitrary"

    out = pl.pallas_call(
        mlp_fused_kernel,
        out_shape=jax.ShapeDtypeStruct((m_pad, O), jnp.float32),
        grid=(n_blocks,),
        in_specs=[row_spec(2), row_spec(1)] + [resident(p) for p in padded_params],
        out_specs=row_spec(O),
        compiler_params=pltpu.CompilerParams(dimension_semantics=(sem,)),
    )(y2, exc, *padded_params)
    return out[:M].reshape(T, B, O)


# ---------------------------------------------------------------------------
# Parameter init (mimics nn.Linear default U(-1/sqrt(fan_in), +)) and one-time
# padding to the kernel's lane-dense layout.
# ---------------------------------------------------------------------------
def init_params(key):
    def linear(k, fan_in, fan_out):
        kw, kb = jax.random.split(k)
        bound = 1.0 / jnp.sqrt(jnp.float32(fan_in))
        w = jax.random.uniform(kw, (fan_in, fan_out), jnp.float32, -bound, bound)
        b = jax.random.uniform(kb, (fan_out,), jnp.float32, -bound, bound)
        return w, b

    k1, k2, k3 = jax.random.split(key, 3)
    w1, b1 = linear(k1, 3, H)
    w2, b2 = linear(k2, H, H)
    w3, b3 = linear(k3, H, 2)
    return (w1, b1, w2, b2, w3, b3)


def pad_params(params):
    """One-time repack: split w1 into (y, excitation) parts, zero-pad to 128 lanes."""
    w1, b1, w2, b2, w3, b3 = params

    def pad2(a, rows, cols):
        return jnp.zeros((rows, cols), jnp.float32).at[:a.shape[0], :a.shape[1]].set(a)

    w1y = pad2(w1[:2, :], 2, H_PAD)       # y-features -> hidden
    w1e = pad2(w1[2:3, :], 1, H_PAD)      # excitation column (rank-1 term)
    b1p = pad2(b1[None, :], 1, H_PAD)
    w2p = pad2(w2, H_PAD, H_PAD)
    b2p = pad2(b2[None, :], 1, H_PAD)
    w3p = pad2(w3, H_PAD, O_PAD)
    b3p = pad2(b3[None, :], 1, O_PAD)
    return (w1y, w1e, b1p, w2p, b2p, w3p, b3p)


# ---------------------------------------------------------------------------
# Pure-JAX references mirroring the PyTorch forward (full f32 precision).
# ---------------------------------------------------------------------------
def mlp_forward_ref(t, y, params):
    w1, b1, w2, b2, w3, b3 = params
    hp = jax.lax.Precision.HIGHEST
    exc = jnp.sin(2.0 * pi * jnp.asarray(t, jnp.float32)).reshape(1, 1)
    x = jnp.concatenate([y, jnp.tile(exc, (y.shape[0], 1))], axis=1)      # (B, 3)
    h = jnp.maximum(jnp.dot(x, w1, precision=hp) + b1, 0.0)
    h = jnp.maximum(jnp.dot(h, w2, precision=hp) + b2, 0.0)
    return jnp.dot(h, w3, precision=hp) + b3


def mlp_forward_many_ref(ts, ys, params):
    w1, b1, w2, b2, w3, b3 = params
    hp = jax.lax.Precision.HIGHEST
    T, B, _ = ys.shape
    exc = jnp.sin(2.0 * pi * ts.astype(jnp.float32))[:, None, None]       # (T,1,1)
    x = jnp.concatenate([ys, jnp.broadcast_to(exc, (T, B, 1))], axis=-1)  # (T,B,3)
    h = jnp.maximum(jnp.einsum("tbi,ij->tbj", x, w1, precision=hp) + b1, 0.0)
    h = jnp.maximum(jnp.einsum("tbi,ij->tbj", h, w2, precision=hp) + b2, 0.0)
    return jnp.einsum("tbi,ij->tbj", h, w3, precision=hp) + b3


if __name__ == "__main__":
    key = jax.random.PRNGKey(0)
    kp, ky, kt = jax.random.split(key, 3)

    params = init_params(kp)
    padded = pad_params(params)

    # --- single evaluation (matches MLP.forward(t, y)) ---
    B = 8
    y = jax.random.normal(ky, (B, 2), jnp.float32)      # state (pos, vel)
    t = jax.random.uniform(kt, (), jnp.float32)         # scalar time

    out = jax.block_until_ready(mlp_forward(t, y, padded))
    ref = mlp_forward_ref(t, y, params)
    assert out.shape == (B, 2)
    assert jnp.allclose(out, ref, atol=2e-5, rtol=2e-5), float(jnp.max(jnp.abs(out - ref)))

    # --- amortized fused-M path: small T (single block) and larger T (multi-block) ---
    for T in (3, 48):
        ky2, kt2 = jax.random.split(jax.random.fold_in(key, T))
        ys = jax.random.normal(ky2, (T, B, 2), jnp.float32)
        ts = jax.random.uniform(kt2, (T,), jnp.float32)
        outs = jax.block_until_ready(mlp_forward_many(ts, ys, padded))
        refs = mlp_forward_many_ref(ts, ys, params)
        assert outs.shape == (T, B, 2)
        assert jnp.allclose(outs, refs, atol=2e-5, rtol=2e-5), float(
            jnp.max(jnp.abs(outs - refs)))

    print("KERNEL_OK")
</pallas_src>

<mosaic_0001>
module attributes {stable_mosaic.version = 11 : i64} {
  func.func @mlp_single_kernel(%arg0: memref<1xf32, #tpu.memory_space<smem>>, %arg1: memref<8x2xf32, #tpu.memory_space<vmem>>, %arg2: memref<2x128xf32, #tpu.memory_space<vmem>>, %arg3: memref<1x128xf32, #tpu.memory_space<vmem>>, %arg4: memref<1x128xf32, #tpu.memory_space<vmem>>, %arg5: memref<128x128xf32, #tpu.memory_space<vmem>>, %arg6: memref<1x128xf32, #tpu.memory_space<vmem>>, %arg7: memref<128x128xf32, #tpu.memory_space<vmem>>, %arg8: memref<1x128xf32, #tpu.memory_space<vmem>>, %arg9: memref<8x2xf32, #tpu.memory_space<vmem>>) attributes {dimension_semantics = [], scalar_prefetch = 0 : i64, scratch_operands = 0 : i64, tpu.core_type = #tpu.core_type<tc>} {
    %c0 = arith.constant 0 : index
    %0 = memref.load %arg0[%c0] : memref<1xf32, #tpu.memory_space<smem>>
    %c0_0 = arith.constant 0 : index
    %c0_1 = arith.constant 0 : index
    %1 = vector.load %arg1[%c0_0, %c0_1] : memref<8x2xf32, #tpu.memory_space<vmem>>, vector<8x2xf32>
    %c0_2 = arith.constant 0 : index
    %c0_3 = arith.constant 0 : index
    %2 = vector.load %arg3[%c0_2, %c0_3] : memref<1x128xf32, #tpu.memory_space<vmem>>, vector<1x128xf32>
    %3 = vector.broadcast %0 : f32 to vector<1x128xf32>
    %4 = arith.mulf %3, %2 : vector<1x128xf32>
    %c0_4 = arith.constant 0 : index
    %c0_5 = arith.constant 0 : index
    %5 = vector.load %arg4[%c0_4, %c0_5] : memref<1x128xf32, #tpu.memory_space<vmem>>, vector<1x128xf32>
    %6 = arith.addf %4, %5 : vector<1x128xf32>
    %7 = vector.extract_strided_slice %1 {offsets = [0, 0], sizes = [8, 1], strides = [1, 1]} : vector<8x2xf32> to vector<8x1xf32>
    %c0_6 = arith.constant 0 : index
    %c0_7 = arith.constant 0 : index
    %8 = vector.load %arg2[%c0_6, %c0_7] : memref<2x128xf32, #tpu.memory_space<vmem>>, vector<1x128xf32>
    %9 = vector.broadcast %7 : vector<8x1xf32> to vector<8x128xf32>
    %10 = vector.broadcast %8 : vector<1x128xf32> to vector<8x128xf32>
    %11 = arith.mulf %9, %10 : vector<8x128xf32>
    %12 = vector.extract_strided_slice %1 {offsets = [0, 1], sizes = [8, 1], strides = [1, 1]} : vector<8x2xf32> to vector<8x1xf32>
    %c1 = arith.constant 1 : index
    %c0_8 = arith.constant 0 : index
    %13 = vector.load %arg2[%c1, %c0_8] : memref<2x128xf32, #tpu.memory_space<vmem>>, vector<1x128xf32>
    %14 = vector.broadcast %12 : vector<8x1xf32> to vector<8x128xf32>
    %15 = vector.broadcast %13 : vector<1x128xf32> to vector<8x128xf32>
    %16 = arith.mulf %14, %15 : vector<8x128xf32>
    %17 = arith.addf %11, %16 : vector<8x128xf32>
    %18 = vector.broadcast %6 : vector<1x128xf32> to vector<8x128xf32>
    %19 = arith.addf %17, %18 : vector<8x128xf32>
    %c0_9 = arith.constant 0 : index
    %c0_10 = arith.constant 0 : index
    %20 = vector.load %arg5[%c0_9, %c0_10] : memref<128x128xf32, #tpu.memory_space<vmem>>, vector<128x128xf32>
    %c0_11 = arith.constant 0 : index
    %c0_12 = arith.constant 0 : index
    %21 = vector.load %arg6[%c0_11, %c0_12] : memref<1x128xf32, #tpu.memory_space<vmem>>, vector<1x128xf32>
    %c0_13 = arith.constant 0 : index
    %c0_14 = arith.constant 0 : index
    %22 = vector.load %arg7[%c0_13, %c0_14] : memref<128x128xf32, #tpu.memory_space<vmem>>, vector<128x128xf32>
    %c0_15 = arith.constant 0 : index
    %c0_16 = arith.constant 0 : index
    %23 = vector.load %arg8[%c0_15, %c0_16] : memref<1x128xf32, #tpu.memory_space<vmem>>, vector<1x128xf32>
    %cst = arith.constant 0.000000e+00 : f32
    %24 = vector.broadcast %cst : f32 to vector<8x128xf32>
    %25 = arith.maximumf %19, %24 : vector<8x128xf32>
    %cst_17 = arith.constant dense<0.000000e+00> : vector<8x128xf32>
    %26 = tpu.matmul %25, %20, %cst_17 {dimension_numbers = #tpu.dot_dimension_numbers<[1], [0], [0], [1], [0, 0, 1, 1], [], []>} : vector<8x128xf32>, vector<128x128xf32>, vector<8x128xf32> -> vector<8x128xf32>
    %27 = vector.broadcast %21 : vector<1x128xf32> to vector<8x128xf32>
    %28 = arith.addf %26, %27 : vector<8x128xf32>
    %cst_18 = arith.constant 0.000000e+00 : f32
    %29 = vector.broadcast %cst_18 : f32 to vector<8x128xf32>
    %30 = arith.maximumf %28, %29 : vector<8x128xf32>
    %cst_19 = arith.constant dense<0.000000e+00> : vector<8x128xf32>
    %31 = tpu.matmul %30, %22, %cst_19 {dimension_numbers = #tpu.dot_dimension_numbers<[1], [0], [0], [1], [0, 0, 1, 1], [], []>} : vector<8x128xf32>, vector<128x128xf32>, vector<8x128xf32> -> vector<8x128xf32>
    %32 = vector.broadcast %23 : vector<1x128xf32> to vector<8x128xf32>
    %33 = arith.addf %31, %32 : vector<8x128xf32>
    %34 = vector.extract_strided_slice %33 {offsets = [0, 0], sizes = [8, 2], strides = [1, 1]} : vector<8x128xf32> to vector<8x2xf32>
    %c0_20 = arith.constant 0 : index
    %c0_21 = arith.constant 0 : index
    %35 = vector.load %arg9[%c0_20, %c0_21] : memref<8x2xf32, #tpu.memory_space<vmem>>, vector<8x2xf32>
    tpu.vector_store %arg9[%c0_20, %c0_21], %34 {strides = array<i32>} : memref<8x2xf32, #tpu.memory_space<vmem>>, vector<8x2xf32>,
    return
  }
}

</mosaic_0001>

<bundles_post_ra>
// kernel: mlp_forward.1
= control target key start
LH: loop header
LB: loop body
LE: loop exit
PB: predicated region body
PF: predicated region fallthrough
CT: control target
= control target key end

     0   :  { %15 = vsyncpa [#allocation4], 0  ;;  %s634_s0 = inlined_call_operand.<no memory space> [shape: f32[1], index: 0, kind: input, shape index: {}]   ;;  %s635_s1 = inlined_call_operand.vmem [shape: f32[8,2], index: 1, kind: input, shape index: {}]   ;;  %s636_s2 = inlined_call_operand.vmem [shape: f32[2,128], index: 2, kind: input, shape index: {}]   ;;  %s637_s3 = inlined_call_operand.vmem [shape: f32[1,128], index: 3, kind: input, shape index: {}]   ;;  %s638_s4 = inlined_call_operand.vmem [shape: f32[1,128], index: 4, kind: input, shape index: {}]   ;;  %s639_s5 = inlined_call_operand.hbm [shape: f32[128,128], index: 5, kind: input, shape index: {}]   ;;  %s640_s6 = inlined_call_operand.vmem [shape: f32[1,128], index: 6, kind: input, shape index: {}]   ;;  %s641_s7 = inlined_call_operand.hbm [shape: f32[128,128], index: 7, kind: input, shape index: {}]   ;;  %s642_s8 = inlined_call_operand.vmem [shape: f32[1,128], index: 8, kind: input, shape index: {}]   ;;  %s643_s9 = inlined_call_operand.vmem [shape: f32[8,2], index: 9, kind: output, shape index: {}]  }
   0x1   :  { %16 = vsyncpa [#allocation6], 0  ;;  %s508_s30 = smov [#allocation3]   ;;  %s460_s13 = scalar_lea.hbm %s639_s5, 2048 }
   0x2   :  { %s32_s10 = sshll.u32 %s508_s30, 4  ;;  %p461_p0 = scmp.ne.s32.totalorder %s639_s5, %s460_s13  ;;  %s33_s10 = int_to_ptr.vmem [resolvable:$true] %s32_s10 }
   0x3   :  { %p464_p1 = scmp.lt.u32.totalorder %s460_s13, %s639_s5 }
   0x5   :  { %p466_p2 = pnand %p464_p1, %p461_p0 }
   0x7   :  { %469 = shalt.err (!%p466_p2)
}
   0x8   :  { %s470_s18 = scalar_lea.vmem %s33_s10, 2048  ;;  %p475_p4 = scmp.lt.s32.totalorder %s33_s10, %s33_s10 }
   0x9   :  { %p471_p3 = scmp.ne.s32.totalorder %s33_s10, %s470_s18  ;;  %p476_p5 = scmp.lt.s32.totalorder %s470_s18, %s470_s18 }
   0xb   :  { %p477_p6 = por %p476_p5, %p475_p4 }
   0xd   :  { %p478_p7 = pnand %p477_p6, %p471_p3 }
   0xf   :  { %481 = shalt.err (!%p478_p7)
}
  0x10   :  { %s509_s19 = smov 128   ;;  %s510_s20 = smov 8  }
  0x11   :  { %38 = dma.hbm_to_vmem [thread:$0]  %s639_s5, 2048, %s33_s10, [#allocation4], %s509_s19, %s509_s19, %s510_s20  }
  0x12   :  { %s511_s23 = smov [#allocation5]   ;;  %s482_s27 = scalar_lea.hbm %s641_s7, 2048 }
  0x13   :  { %s46_s24 = sshll.u32 %s511_s23, 4  ;;  %p483_p8 = scmp.ne.s32.totalorder %s641_s7, %s482_s27  ;;  %s47_s24 = int_to_ptr.vmem [resolvable:$true] %s46_s24 }
  0x14   :  { %p486_p9 = scmp.lt.u32.totalorder %s482_s27, %s641_s7 }
  0x16   :  { %p488_p10 = pnand %p486_p9, %p483_p8 }
  0x18   :  { %491 = shalt.err (!%p488_p10)
}
  0x19   :  { %s492_s12 = scalar_lea.vmem %s47_s24, 2048  ;;  %p497_p12 = scmp.lt.s32.totalorder %s47_s24, %s47_s24 }
  0x1a   :  { %p493_p11 = scmp.ne.s32.totalorder %s47_s24, %s492_s12  ;;  %p498_p13 = scmp.lt.s32.totalorder %s492_s12, %s492_s12 }
  0x1c   :  { %p499_p0 = por %p498_p13, %p497_p12 }
  0x1e   :  { %p500_p1 = pnand %p499_p0, %p493_p11 }
  0x20   :  { %503 = shalt.err (!%p500_p1)
}
  0x21   :  { %52 = dma.hbm_to_vmem [thread:$0]  %s641_s7, 2048, %s47_s24, [#allocation6], %s509_s19, %s509_s19, %s510_s20  }
  0x22   :  { %504 = dma.done.wait [#allocation4], 2048  }
  0x23   :  { %505 = vsyncadd [#allocation4], 4294965248 }
  0x24   :  { %506 = dma.done.wait [#allocation6], 2048  }
  0x25   :  { %507 = vsyncadd [#allocation6], 4294965248  ;;  %v512_v0 = vmov 0   ;;  %v513_v1 = vmov 0.0|0.0   ;;  %v62_v2 = vld [vmem:[%s635_s1] sm:$0xff]  ;;  %v98_v4 = vld [vmem:[#allocation3 + $0x8] sm:$0xff]  ;;  %v91_v50 = vlaneseq  ;;  %v64_v52 = vstv %s634_s0 }
  0x26   :  { %458 = vset.pattern.permute.xlu0 %v512_v0  ;;  %401 = vmatprep.subr.bf16.mxu0 %v513_v1  ;;  %v97_v3 = vld [vmem:[#allocation3] sm:$0xff]  ;;  %v99_v6 = vld [vmem:[#allocation3 + $0x10] sm:$0xff]  ;;  %v100_v7 = vld [vmem:[#allocation3 + $0x18] sm:$0xff]  ;;  %v514_v11 = vmov 1   ;;  %vm515_vm0 = vmmov 0   ;;  %v516_v15 = vmov 0.0  }
  0x27   :  { %425 = vmatprep.subr.bf16.mxu1 %v513_v1  ;;  %71 = vperm.xlu0 %458, %v62_v2   ;;  %v402_v5 = vpack.c.bf16 %v98_v4, %v97_v3  ;;  %v405_v8 = vpack.c.bf16 %v100_v7, %v99_v6  ;;  %v101_v9 = vld [vmem:[#allocation3 + $0x20] sm:$0xff]  ;;  %v102_v10 = vld [vmem:[#allocation3 + $0x28] sm:$0xff]  ;;  %v103_v13 = vld [vmem:[#allocation3 + $0x30] sm:$0xff]  ;;  %v92_v54 = vshrl.u32 %v91_v50, 7  ;;  %vm285_vm1 = vcmask 15360  }
  0x28   :  { %v408_v12 = vpack.c.bf16 %v102_v10, %v101_v9  ;;  %v104_v14 = vld [vmem:[#allocation3 + $0x38] sm:$0xff]  ;;  %363 = vmatprep.mubr.msk.f32.mxu0 %vm515_vm0, %v516_v15  ;;  %398 = vmatprep.mubr.msk.f32.mxu1 %vm515_vm0, %v516_v15  ;;  %v105_v17 = vld [vmem:[#allocation3 + $0x40] sm:$0xff]  ;;  %v106_v18 = vld [vmem:[#allocation3 + $0x48] sm:$0xff] }
  0x29   :  { %403 = vmatpush3.bf16.msra.mxu0 %v402_v5  ;;  %v411_v16 = vpack.c.bf16 %v104_v14, %v103_v13  ;;  %v114_v19 = vld [vmem:[#allocation5] sm:$0xff]  ;;  %v115_v20 = vld [vmem:[#allocation5 + $0x8] sm:$0xff]  ;;  %v116_v21 = vld [vmem:[#allocation5 + $0x10] sm:$0xff]  ;;  %v414_v22 = vpack.c.bf16 %v106_v18, %v105_v17  ;;  %v93_v58 = vsub.s32 0, %v92_v54 }
  0x2a   :  { %404 = vmatprep.subr.bf16.mxu0 %v513_v1  ;;  %v426_v23 = vpack.c.bf16 %v115_v20, %v114_v19  ;;  %v117_v24 = vld [vmem:[#allocation5 + $0x18] sm:$0xff]  ;;  %v107_v25 = vld [vmem:[#allocation3 + $0x50] sm:$0xff]  ;;  %v118_v28 = vld [vmem:[#allocation5 + $0x20] sm:$0xff] }
  0x2b   :  { %459 = vset.pattern.permute.xlu0 %v514_v11  ;;  %v108_v26 = vld [vmem:[#allocation3 + $0x58] sm:$0xff]  ;;  %v429_v27 = vpack.c.bf16 %v117_v24, %v116_v21  ;;  %v119_v29 = vld [vmem:[#allocation5 + $0x28] sm:$0xff]  ;;  %v109_v31 = vld [vmem:[#allocation3 + $0x60] sm:$0xff] }
  0x2c   :  { %81 = vperm.xlu0 %459, %v62_v2   ;;  %427 = vmatpush3.bf16.msra.mxu1 %v426_v23  ;;  %v417_v30 = vpack.c.bf16 %v108_v26, %v107_v25  ;;  %v110_v32 = vld [vmem:[#allocation3 + $0x68] sm:$0xff]  ;;  %v432_v33 = vpack.c.bf16 %v119_v29, %v118_v28  ;;  %v120_v34 = vld [vmem:[#allocation5 + $0x30] sm:$0xff]  ;;  %v121_v35 = vld [vmem:[#allocation5 + $0x38] sm:$0xff] }
  0x2d   :  { %406 = vmatpush3.bf16.msra.mxu0 %v405_v8  ;;  %428 = vmatprep.subr.bf16.mxu1 %v513_v1  ;;  %v420_v36 = vpack.c.bf16 %v110_v32, %v109_v31  ;;  %v111_v37 = vld [vmem:[#allocation3 + $0x70] sm:$0xff]  ;;  %v112_v38 = vld [vmem:[#allocation3 + $0x78] sm:$0xff]  ;;  %v435_v39 = vpack.c.bf16 %v121_v35, %v120_v34  ;;  %v122_v40 = vld [vmem:[#allocation5 + $0x40] sm:$0xff] }
  0x2e   :  { %407 = vmatprep.subr.bf16.mxu0 %v513_v1  ;;  %v123_v41 = vld [vmem:[#allocation5 + $0x48] sm:$0xff]  ;;  %v423_v42 = vpack.c.bf16 %v112_v38, %v111_v37  ;;  %v124_v44 = vld [vmem:[#allocation5 + $0x50] sm:$0xff]  ;;  %v125_v45 = vld [vmem:[#allocation5 + $0x58] sm:$0xff] }
  0x2f   :  { %v438_v43 = vpack.c.bf16 %v123_v41, %v122_v40  ;;  %v441_v46 = vpack.c.bf16 %v125_v45, %v124_v44  ;;  %v126_v47 = vld [vmem:[#allocation5 + $0x60] sm:$0xff]  ;;  %v127_v48 = vld [vmem:[#allocation5 + $0x68] sm:$0xff]  ;;  %v128_v4 = vld [vmem:[#allocation5 + $0x70] sm:$0xff] }
  0x30   :  { %430 = vmatpush3.bf16.msra.mxu1 %v429_v27  ;;  %v444_v49 = vpack.c.bf16 %v127_v48, %v126_v47  ;;  %v63_v51 = vld [vmem:[%s637_s3] sm:$0x1]  ;;  %v294_v60 = vld [vmem:[%s636_s2 + $0x1] ss:$0 sm:$0xff]  ;;  %v129_v5 = vld [vmem:[#allocation5 + $0x78] sm:$0xff] }
  0x31   :  { %409 = vmatpush3.bf16.msra.mxu0 %v408_v12  ;;  %431 = vmatprep.subr.bf16.mxu1 %v513_v1  ;;  %v65_v53 = vmul.f32 %v64_v52, %v63_v51  ;;  %v66_v55 = vld [vmem:[%s638_s4] sm:$0x1]  ;;  %v447_v6 = vpack.c.bf16 %v129_v5, %v128_v4 }
  0x32   :  { %410 = vmatprep.subr.bf16.mxu0 %v513_v1  ;;  %v293_v59 = vld [vmem:[%s636_s2] ss:$0 sm:$0xff] }
  0x33   :  { %v67_v57 = vadd.f32 %v66_v55, %v65_v53  ;;  %v295_v7 = vld [vmem:[%s640_s6] ss:$0 sm:$0xff] }
  0x34   :  { %433 = vmatpush3.bf16.msra.mxu1 %v432_v33  ;;  %v296_v12 = vld [vmem:[%s642_s8] ss:$0 sm:$0xff] }
  0x35   :  { %412 = vmatpush3.bf16.msra.mxu0 %v411_v16  ;;  %434 = vmatprep.subr.bf16.mxu1 %v513_v1  ;;  %v94_v0 = vrot.slane %v67_v57, %v93_v58 }
  0x36   :  { %413 = vmatprep.subr.bf16.mxu0 %v513_v1 }
  0x38   :  { %436 = vmatpush3.bf16.msra.mxu1 %v435_v39 }
  0x39   :  { %415 = vmatpush3.bf16.msra.mxu0 %v414_v22  ;;  %437 = vmatprep.subr.bf16.mxu1 %v513_v1 }
  0x3a   :  { %416 = vmatprep.subr.bf16.mxu0 %v513_v1 }
  0x3c   :  { %439 = vmatpush3.bf16.msra.mxu1 %v438_v43 }
  0x3d   :  { %418 = vmatpush3.bf16.msra.mxu0 %v417_v30  ;;  %440 = vmatprep.subr.bf16.mxu1 %v513_v1 }
  0x3e   :  { %419 = vmatprep.subr.bf16.mxu0 %v513_v1 }
  0x40   :  { %442 = vmatpush3.bf16.msra.mxu1 %v441_v46 }
  0x41   :  { %421 = vmatpush3.bf16.msra.mxu0 %v420_v36  ;;  %443 = vmatprep.subr.bf16.mxu1 %v513_v1 }
  0x42   :  { %422 = vmatprep.subr.bf16.mxu0 %v513_v1 }
  0x44   :  { %445 = vmatpush3.bf16.msra.mxu1 %v444_v49 }
  0x45   :  { %424 = vmatpush3.bf16.msra.mxu0 %v423_v42  ;;  %446 = vmatprep.subr.bf16.mxu1 %v513_v1 }
  0x48   :  { %448 = vmatpush3.bf16.msra.mxu1 %v447_v6 }
  0xa6   :  { %v72_v56 = vpop.permute.xlu0 %71 }
  0xa7   :  { %v78_v62 = vmul.f32 %v293_v59, %v72_v56 }
  0xab   :  { %v82_v61 = vpop.permute.xlu0 %81 }
  0xac   :  { %v88_v63 = vmul.f32 %v294_v60, %v82_v61 }
  0xae   :  { %v89_v1 = vadd.f32 %v88_v63, %v78_v62 }
  0xb0   :  { %v96_v2 = vadd.f32 %v94_v0, %v89_v1 }
  0xb2   :  { %v131_v3 = vmax.f32 %v96_v2, 0.0 }
  0xb4   :  { %364 = vmatmul.mubr.f32.vlgmr.msra.gmra.mrb[0].mxu0 %v131_v3 }
 0x187   :  { %v204_v8 = vpop.f32.mrb[0].mxu0 }
 0x188   :  { %v205_v9 = vadd.f32 %v295_v7, %v204_v8  ;;  %v365_v10 = vpop.f32.mrb[1].mxu0 }
 0x18a   :  { %v208_v11 = vmax.f32 %v205_v9, 0.0 }
 0x18c   :  { %399 = vmatmul.mubr.f32.vlgmr.msra.gmra.mrb[0].mxu1 %v208_v11 }
 0x25f   :  { %v281_v13 = vpop.f32.mrb[0].mxu1 }
 0x260   :  { %v282_v14 = vadd.f32 %v296_v12, %v281_v13  ;;  %v400_v15 = vpop.f32.mrb[1].mxu1 }
 0x262   :  { %286 = vst.msk [vmem:[%s643_s9] sm:$0xff] %vm285_vm1, %v282_v14 }
 0x263   :  { %291 = vsyncpa [#allocation4], 1 }
 0x264   :  { %292 = vsyncpa [#allocation6], 1 }

</bundles_post_ra>
